<compile_context>
chip_gen: v7x
topology: tpu7x:2x2x1
jax: 0.10.0
libtpu: 0.0.40
codegen_flags: <defaults>
</compile_context>

<pallas_src>
import jax
import jax.numpy as jnp
from jax.experimental import pallas as pl
from jax.experimental.pallas import tpu as pltpu


def _round_up(x, m):
    return ((x + m - 1) // m) * m


def _spec(shape, index_map, buffers=None):
    """BlockSpec with an optional buffer-count hint (graceful fallback if unsupported)."""
    if buffers is None:
        return pl.BlockSpec(shape, index_map)
    try:
        return pl.BlockSpec(shape, index_map, pipeline_mode=pl.Buffered(buffers))
    except TypeError:  # older jax without pipeline_mode: accept default double buffering
        return pl.BlockSpec(shape, index_map)


def _fc_decoder_kernel(x_ref, w1_ref, b1_ref, w2_ref, b2_ref, o_ref, acc_ref):
    # x_ref : (TILE_N, TILE_K) input dtype   w1_ref: (TILE_K, H_pad) matmul dtype (bf16)
    # b1_ref: (1, H_pad) f32                 w2_ref: (H_pad, C) f32      b2_ref: (1, C) f32
    # o_ref : (TILE_N, C)                    acc_ref: (TILE_N, H_pad) f32 scratch
    k = pl.program_id(1)

    @pl.when(k == 0)
    def _init():
        acc_ref[...] = jnp.zeros_like(acc_ref)

    # Dominant GEMM: cast x to the matmul dtype in VMEM (no extra HBM pass), f32 MXU accum.
    x = x_ref[...].astype(w1_ref.dtype)
    acc_ref[...] += jnp.dot(x, w1_ref[...], preferred_element_type=jnp.float32)

    @pl.when(k == pl.num_programs(1) - 1)
    def _finalize():
        h = jax.nn.sigmoid(acc_ref[...] + b1_ref[...])
        # dropout1 is identity at inference time (eval mode) -- elided.
        out = jnp.dot(h, w2_ref[...], preferred_element_type=jnp.float32) + b2_ref[...]
        o_ref[...] = out.astype(o_ref.dtype)


def fc_decoder(hs, w1, b1, w2, b2, *, matmul_dtype=jnp.bfloat16):
    """hs: (B, S, D).  w1: (D, H), b1: (H,), w2: (H, C), b2: (C,).  Returns (B, S, C)."""
    B, S, D = hs.shape
    H = w1.shape[1]
    C = w2.shape[1]
    N = B * S
    out_dtype = hs.dtype
    x_itemsize = jnp.dtype(hs.dtype).itemsize
    w_itemsize = jnp.dtype(matmul_dtype).itemsize

    # Hidden dim padded to a lane multiple; exact (sigmoid(0)=0.5 hits zero-padded W2 rows).
    # TODO(synk): consider 256-alignment for H on the 2x256 MXUs (v6e/v7x) when H >= 256.
    H_pad = _round_up(max(H, 128), 128)

    # Generation-aware VMEM budget (v5e/v6e: 128 MiB, v7x: 64 MiB per core).
    try:
        vmem_cap = int(pltpu.get_tpu_info().vmem_capacity_bytes)
    except Exception:
        vmem_cap = 64 * 1024 * 1024
    budget = int(vmem_cap * 0.75)  # headroom for Mosaic internal scratch / spills

    # Row tile: bigger on 128 MiB parts to amortize per-step overhead; 512 on v7x.
    tile_n = 1024 if vmem_cap >= 96 * 1024 * 1024 else 512
    tile_n = min(tile_n, _round_up(N, 16))
    # TODO(synk): on v7x, force >= 2 (even) row tiles for medium N so both TCs get work.

    def _vmem_usage(tn, tk, w1_bufs):
        return (
            2 * tn * tk * x_itemsize             # x tiles (double buffered, original dtype)
            + w1_bufs * tk * H_pad * w_itemsize  # W1 (bf16): 1 buf resident / 2 when streamed
            + H_pad * C * 4                      # W2 resident (f32)
            + (H_pad + C) * 4                    # biases
            + 2 * tn * C * 4                     # out tiles (double buffered)
            + tn * H_pad * 4                     # f32 accumulator scratch
            + tn * max(tk, H_pad) * 4            # in-kernel temporaries headroom (cast x, h)
        )

    # Keep W1 fully resident when it fits; otherwise stream it along D (K-split accumulator).
    tile_k, num_k, w1_bufs = D, 1, 1
    if _vmem_usage(tile_n, D, 1) > budget:
        w1_bufs = 2
        num_k = 2
        while True:
            tile_k = _round_up(pl.cdiv(D, num_k), 128)
            if _vmem_usage(tile_n, tile_k, 2) <= budget or tile_k <= 128:
                break
            num_k += 1
        num_k = pl.cdiv(D, tile_k)
        # TODO(synk): also shrink tile_n if a single 128-wide K slice still exceeds the budget.
    D_pad = tile_k * num_k

    # Wrapper only touches the small weights/biases; x passes through untouched so its cast
    # (and any padding) is folded into the kernel's VMEM stage.
    x = hs.reshape(N, D)
    if D_pad != D:
        # Rare: only when K-splitting a D that is not a multiple of 128.
        x = jnp.pad(x, ((0, 0), (0, D_pad - D)))
    w1c = jnp.pad(w1, ((0, D_pad - D), (0, H_pad - H))).astype(matmul_dtype)
    b1_2d = jnp.pad(b1, (0, H_pad - H)).reshape(1, H_pad).astype(jnp.float32)
    w2f = jnp.pad(w2, ((0, H_pad - H), (0, 0))).astype(jnp.float32)
    b2_2d = b2.reshape(1, C).astype(jnp.float32)

    grid = (pl.cdiv(N, tile_n), num_k)

    cost = pl.CostEstimate(
        flops=2 * N * D_pad * H_pad + 2 * N * H_pad * C,
        transcendentals=N * H_pad,
        bytes_accessed=(
            N * D_pad * x_itemsize
            + D_pad * H_pad * w_itemsize
            + H_pad * C * 4
            + (H_pad + C) * 4
            + N * C * jnp.dtype(out_dtype).itemsize
        ),
    )

    out = pl.pallas_call(
        _fc_decoder_kernel,
        out_shape=jax.ShapeDtypeStruct((N, C), out_dtype),
        grid=grid,
        in_specs=[
            # x: streamed per (row, k) tile; cast to bf16 inside the kernel.
            pl.BlockSpec((tile_n, tile_k), lambda i, k: (i, k)),
            # W1: resident (1 buffer) when num_k == 1, streamed (2 buffers) otherwise.
            _spec((tile_k, H_pad), lambda i, k: (k, 0), buffers=1 if num_k == 1 else None),
            _spec((1, H_pad), lambda i, k: (0, 0), buffers=1),   # b1 resident
            _spec((H_pad, C), lambda i, k: (0, 0), buffers=1),   # W2 resident (f32)
            _spec((1, C), lambda i, k: (0, 0), buffers=1),       # b2 resident
        ],
        # Unpadded (N, C) output block -> no post-kernel slice pass.
        out_specs=pl.BlockSpec((tile_n, C), lambda i, k: (i, 0)),
        scratch_shapes=[pltpu.VMEM((tile_n, H_pad), jnp.float32)],
        compiler_params=pltpu.CompilerParams(
            dimension_semantics=("parallel", "arbitrary"),
            vmem_limit_bytes=int(vmem_cap * 0.8),
        ),
        cost_estimate=cost,
    )(x, w1c, b1_2d, w2f, b2_2d)

    return out.reshape(B, S, C)


def init_params(key, dim_feedforward, num_class):
    """Deterministic init matching FC_Decoder's parameter shapes.

    PyTorch nn.Linear stores weight as (out, in); we keep the transposed (in, out)
    layout so the kernel multiplies without a transpose.
    """
    hidden = dim_feedforward // 2
    k1, k2, k3, k4 = jax.random.split(key, 4)
    lim1 = 1.0 / jnp.sqrt(dim_feedforward)
    lim2 = 1.0 / jnp.sqrt(hidden)
    w1 = jax.random.uniform(k1, (dim_feedforward, hidden), jnp.float32, -lim1, lim1)
    b1 = jax.random.uniform(k2, (hidden,), jnp.float32, -lim1, lim1)
    w2 = jax.random.uniform(k3, (hidden, num_class), jnp.float32, -lim2, lim2)
    b2 = jax.random.uniform(k4, (num_class,), jnp.float32, -lim2, lim2)
    return w1, b1, w2, b2


if __name__ == "__main__":
    # Small shapes consistent with the module: hs = (batch, num_queries, dim_feedforward)
    B, S = 2, 8
    dim_feedforward = 32
    num_class = 16

    key = jax.random.PRNGKey(0)
    k_x, k_p = jax.random.split(key)
    hs = jax.random.normal(k_x, (B, S, dim_feedforward), dtype=jnp.float32)
    w1, b1, w2, b2 = init_params(k_p, dim_feedforward, num_class)

    out = fc_decoder(hs, w1, b1, w2, b2)
    out = jax.block_until_ready(out)
    assert out.shape == (B, S, num_class)
    assert bool(jnp.all(jnp.isfinite(out)))

    # Reference mirroring the kernel numerics (bf16 first GEMM, f32 everything after).
    h_ref = jax.nn.sigmoid(
        jnp.dot(hs.astype(jnp.bfloat16), w1.astype(jnp.bfloat16),
                preferred_element_type=jnp.float32) + b1
    )
    ref_mixed = jnp.dot(h_ref, w2, preferred_element_type=jnp.float32) + b2
    assert jnp.allclose(out, ref_mixed, atol=1e-2, rtol=1e-2), float(
        jnp.max(jnp.abs(out - ref_mixed)))

    # Loose check against pure-f32 module semantics (bf16 rounding on the first GEMM only).
    ref_f32 = jax.nn.sigmoid(hs @ w1 + b1) @ w2 + b2
    assert jnp.allclose(out, ref_f32, atol=5e-2, rtol=5e-2)

    print("KERNEL_OK")
</pallas_src>

<mosaic_0001>
module attributes {stable_mosaic.version = 11 : i64} {
  func.func @_fc_decoder_kernel(%arg0: i32, %arg1: i32, %arg2: memref<16x32xf32, #tpu.memory_space<vmem>>, %arg3: memref<32x128xbf16, #tpu.memory_space<vmem>>, %arg4: memref<1x128xf32, #tpu.memory_space<vmem>>, %arg5: memref<128x16xf32, #tpu.memory_space<vmem>>, %arg6: memref<1x16xf32, #tpu.memory_space<vmem>>, %arg7: memref<16x16xf32, #tpu.memory_space<vmem>>, %arg8: memref<16x128xf32, #tpu.memory_space<vmem>>) attributes {dimension_semantics = [#tpu.dimension_semantics<parallel>, #tpu.dimension_semantics<arbitrary>], iteration_bounds = array<i64: 1, 1>, scalar_prefetch = 0 : i64, scratch_operands = 1 : i64, tpu.core_type = #tpu.core_type<tc>, window_params = [{transform_indices = @transform_0, window_bounds = array<i64: 16, 32>}, {pipeline_mode = #tpu.pipeline_mode<synchronous>, transform_indices = @transform_1, window_bounds = array<i64: 32, 128>}, {pipeline_mode = #tpu.pipeline_mode<synchronous>, transform_indices = @transform_2, window_bounds = array<i64: 1, 128>}, {pipeline_mode = #tpu.pipeline_mode<synchronous>, transform_indices = @transform_3, window_bounds = array<i64: 128, 16>}, {pipeline_mode = #tpu.pipeline_mode<synchronous>, transform_indices = @transform_4, window_bounds = array<i64: 1, 16>}, {transform_indices = @transform_5, window_bounds = array<i64: 16, 16>}]} {
    %c0_i32 = arith.constant 0 : i32
    %0 = arith.cmpi eq, %arg1, %c0_i32 : i32
    %1 = arith.extui %0 : i1 to i32
    %c0_i32_0 = arith.constant 0 : i32
    %2 = arith.cmpi ne, %1, %c0_i32_0 : i32
    scf.if %2 {
      %cst_10 = arith.constant 0.000000e+00 : f32
      %13 = vector.broadcast %cst_10 : f32 to vector<16x128xf32>
      %c0_11 = arith.constant 0 : index
      %c0_12 = arith.constant 0 : index
      %14 = vector.load %arg8[%c0_11, %c0_12] : memref<16x128xf32, #tpu.memory_space<vmem>>, vector<16x128xf32>
      tpu.vector_store %arg8[%c0_11, %c0_12], %13 {strides = array<i32>} : memref<16x128xf32, #tpu.memory_space<vmem>>, vector<16x128xf32>,
    } else {
    }
    %c0 = arith.constant 0 : index
    %c0_1 = arith.constant 0 : index
    %3 = vector.load %arg2[%c0, %c0_1] : memref<16x32xf32, #tpu.memory_space<vmem>>, vector<16x32xf32>
    %4 = arith.truncf %3 : vector<16x32xf32> to vector<16x32xbf16>
    %c0_2 = arith.constant 0 : index
    %c0_3 = arith.constant 0 : index
    %5 = vector.load %arg8[%c0_2, %c0_3] : memref<16x128xf32, #tpu.memory_space<vmem>>, vector<16x128xf32>
    %c0_4 = arith.constant 0 : index
    %c0_5 = arith.constant 0 : index
    %6 = vector.load %arg3[%c0_4, %c0_5] : memref<32x128xbf16, #tpu.memory_space<vmem>>, vector<32x128xbf16>
    %cst = arith.constant dense<0.000000e+00> : vector<16x128xf32>
    %7 = tpu.matmul %4, %6, %cst {dimension_numbers = #tpu.dot_dimension_numbers<[1], [0], [0], [1], [0, 0, 1, 1], [], []>} : vector<16x32xbf16>, vector<32x128xbf16>, vector<16x128xf32> -> vector<16x128xf32>
    %8 = arith.addf %5, %7 : vector<16x128xf32>
    %c0_6 = arith.constant 0 : index
    %c0_7 = arith.constant 0 : index
    %9 = vector.load %arg8[%c0_6, %c0_7] : memref<16x128xf32, #tpu.memory_space<vmem>>, vector<16x128xf32>
    tpu.vector_store %arg8[%c0_6, %c0_7], %8 {strides = array<i32>} : memref<16x128xf32, #tpu.memory_space<vmem>>, vector<16x128xf32>,
    %c0_i32_8 = arith.constant 0 : i32
    %10 = arith.cmpi eq, %arg1, %c0_i32_8 : i32
    %11 = arith.extui %10 : i1 to i32
    %c0_i32_9 = arith.constant 0 : i32
    %12 = arith.cmpi ne, %11, %c0_i32_9 : i32
    scf.if %12 {
      %c0_10 = arith.constant 0 : index
      %c0_11 = arith.constant 0 : index
      %13 = vector.load %arg8[%c0_10, %c0_11] : memref<16x128xf32, #tpu.memory_space<vmem>>, vector<16x128xf32>
      %c0_12 = arith.constant 0 : index
      %c0_13 = arith.constant 0 : index
      %14 = vector.load %arg4[%c0_12, %c0_13] : memref<1x128xf32, #tpu.memory_space<vmem>>, vector<1x128xf32>
      %15 = vector.broadcast %14 : vector<1x128xf32> to vector<16x128xf32>
      %16 = arith.addf %13, %15 : vector<16x128xf32>
      %17 = arith.negf %16 : vector<16x128xf32>
      %18 = math.exp %17 : vector<16x128xf32>
      %cst_14 = arith.constant 1.000000e+00 : f32
      %19 = vector.broadcast %cst_14 : f32 to vector<16x128xf32>
      %20 = arith.addf %19, %18 : vector<16x128xf32>
      %21 = arith.divf %19, %20 : vector<16x128xf32>
      %c0_15 = arith.constant 0 : index
      %c0_16 = arith.constant 0 : index
      %22 = vector.load %arg5[%c0_15, %c0_16] : memref<128x16xf32, #tpu.memory_space<vmem>>, vector<128x16xf32>
      %cst_17 = arith.constant dense<0.000000e+00> : vector<16x16xf32>
      %23 = tpu.matmul %21, %22, %cst_17 {dimension_numbers = #tpu.dot_dimension_numbers<[1], [0], [0], [1], [0, 0, 1, 1], [], []>} : vector<16x128xf32>, vector<128x16xf32>, vector<16x16xf32> -> vector<16x16xf32>
      %c0_18 = arith.constant 0 : index
      %c0_19 = arith.constant 0 : index
      %24 = vector.load %arg6[%c0_18, %c0_19] : memref<1x16xf32, #tpu.memory_space<vmem>>, vector<1x16xf32>
      %25 = vector.broadcast %24 : vector<1x16xf32> to vector<16x16xf32>
      %26 = arith.addf %23, %25 : vector<16x16xf32>
      %c0_20 = arith.constant 0 : index
      %c0_21 = arith.constant 0 : index
      %27 = vector.load %arg7[%c0_20, %c0_21] : memref<16x16xf32, #tpu.memory_space<vmem>>, vector<16x16xf32>
      tpu.vector_store %arg7[%c0_20, %c0_21], %26 {strides = array<i32>} : memref<16x16xf32, #tpu.memory_space<vmem>>, vector<16x16xf32>,
    } else {
    }
    return
  }
  func.func @transform_0(%arg0: i32, %arg1: i32) -> (i32, i32) {
    %c0_i32 = arith.constant 0 : i32
    return %arg0, %arg1 : i32, i32
  }
  func.func @transform_1(%arg0: i32, %arg1: i32) -> (i32, i32) {
    %c0_i32 = arith.constant 0 : i32
    %c0_i32_0 = arith.constant 0 : i32
    return %arg1, %c0_i32 : i32, i32
  }
  func.func @transform_2(%arg0: i32, %arg1: i32) -> (i32, i32) {
    %c0_i32 = arith.constant 0 : i32
    %c0_i32_0 = arith.constant 0 : i32
    %c0_i32_1 = arith.constant 0 : i32
    return %c0_i32, %c0_i32_0 : i32, i32
  }
  func.func @transform_3(%arg0: i32, %arg1: i32) -> (i32, i32) {
    %c0_i32 = arith.constant 0 : i32
    %c0_i32_0 = arith.constant 0 : i32
    %c0_i32_1 = arith.constant 0 : i32
    return %c0_i32, %c0_i32_0 : i32, i32
  }
  func.func @transform_4(%arg0: i32, %arg1: i32) -> (i32, i32) {
    %c0_i32 = arith.constant 0 : i32
    %c0_i32_0 = arith.constant 0 : i32
    %c0_i32_1 = arith.constant 0 : i32
    return %c0_i32, %c0_i32_0 : i32, i32
  }
  func.func @transform_5(%arg0: i32, %arg1: i32) -> (i32, i32) {
    %c0_i32 = arith.constant 0 : i32
    %c0_i32_0 = arith.constant 0 : i32
    return %arg0, %c0_i32 : i32, i32
  }
}

</mosaic_0001>

<bundles_post_ra>
// kernel: tpu_custom_call.1
= control target key start
LH: loop header
LB: loop body
LE: loop exit
PB: predicated region body
PF: predicated region fallthrough
CT: control target
= control target key end

     0   :  { %v383_v1 = vmov 0.0   ;;  %vm384_vm0 = vmmov 0   ;;  %s496_s0 = inlined_call_operand.vmem [shape: f32[16,32], index: 0, kind: input, shape index: {}]   ;;  %s497_s1 = inlined_call_operand.vmem [shape: bf16[32,128], index: 1, kind: input, shape index: {}]   ;;  %s498_s2 = inlined_call_operand.vmem [shape: f32[1,128], index: 2, kind: input, shape index: {}]   ;;  %s499_s3 = inlined_call_operand.vmem [shape: f32[128,16], index: 3, kind: input, shape index: {}]   ;;  %s500_s4 = inlined_call_operand.vmem [shape: f32[1,16], index: 4, kind: input, shape index: {}]   ;;  %s501_s5 = inlined_call_operand.hbm [shape: f32[16,16], index: 5, kind: output, shape index: {}]  }
   0x1   :  { %v349_v0 = vld [vmem:[%s497_s1] sm:$0xff]   ;;  %269 = vmatprep.subr.bf16.mxu0 %v383_v1  ;;  %v350_v2 = vld [vmem:[%s497_s1 + $0x8] sm:$0xff]   ;;  %273 = vmatprep.mubr.msk.bf16.mxu0 %vm384_vm0, %v383_v1 }
   0x2   :  { %270 = vmatpush3.bf16.msra.mxu0 %v349_v0  ;;  %v28_v3 = vld [vmem:[%s496_s0] sm:$0xff]  ;;  %v29_v4 = vld [vmem:[%s496_s0 + $0x8] sm:$0xff] }
   0x3   :  { %v124_v5 = vld [vmem:[%s499_s3] sm:$0xff]  ;;  %271 = vmatprep.subr.bf16.mxu0 %v383_v1  ;;  %v125_v6 = vld [vmem:[%s499_s3 + $0x8] sm:$0xff] }
   0x4   :  { %10 = vsyncpa [#allocation4], 0  ;;  %v312_v7 = vpack.c.bf16 %v125_v6, %v124_v5  ;;  %v30_v8 = vpack.c.bf16 %v29_v4, %v28_v3  ;;  %vm49_vm1 = vcmask 261120   ;;  %v126_v9 = vld [vmem:[%s499_s3 + $0x10] sm:$0xff]  ;;  %v127_v10 = vld [vmem:[%s499_s3 + $0x18] sm:$0xff]  ;;  %s385_s6 = smov [#allocation3]  }
   0x5   :  { %v316_v11 = vpack.c.bf16 %v127_v10, %v126_v9  ;;  %v128_v12 = vld [vmem:[%s499_s3 + $0x20] sm:$0xff]  ;;  %v129_v13 = vld [vmem:[%s499_s3 + $0x28] sm:$0xff]  ;;  %v130_v15 = vld [vmem:[%s499_s3 + $0x30] sm:$0xff]  ;;  %s230_s7 = sshll.u32 %s385_s6, 4  ;;  %vm222_vm2 = vcmask 130048   ;;  %s231_s7 = int_to_ptr.vmem [resolvable:$true] %s230_s7 }
   0x6   :  { %272 = vmatpush3.bf16.msra.mxu0 %v350_v2  ;;  %313 = vmatprep.subr.bf16.mxu1 %v312_v7  ;;  %v320_v14 = vpack.c.bf16 %v129_v13, %v128_v12  ;;  %v131_v16 = vld [vmem:[%s499_s3 + $0x38] sm:$0xff]  ;;  %v132_v18 = vld [vmem:[%s499_s3 + $0x40] sm:$0xff]  ;;  %v133_v19 = vld [vmem:[%s499_s3 + $0x48] sm:$0xff]  ;;  %s359_s8 = scalar_lea.vmem %s231_s7, 256  ;;  %p364_p1 = scmp.lt.s32.totalorder %s231_s7, %s231_s7 }
   0x7   :  { %315 = vmatpush3.bf16.msra.mxu1 %v312_v7  ;;  %v324_v17 = vpack.c.bf16 %v131_v16, %v130_v15  ;;  %v328_v20 = vpack.c.bf16 %v133_v19, %v132_v18  ;;  %v134_v21 = vld [vmem:[%s499_s3 + $0x50] sm:$0xff]  ;;  %v135_v22 = vld [vmem:[%s499_s3 + $0x58] sm:$0xff]  ;;  %v136_v24 = vld [vmem:[%s499_s3 + $0x60] sm:$0xff]  ;;  %p360_p0 = scmp.ne.s32.totalorder %s231_s7, %s359_s8  ;;  %p365_p2 = scmp.lt.s32.totalorder %s359_s8, %s359_s8 }
   0x8   :  { %317 = vmatprep.subr.bf16.mxu1 %v316_v11  ;;  %v332_v23 = vpack.c.bf16 %v135_v22, %v134_v21  ;;  %v137_v25 = vld [vmem:[%s499_s3 + $0x68] sm:$0xff]  ;;  %v138_v26 = vld [vmem:[%s499_s3 + $0x70] sm:$0xff]  ;;  %v139_v28 = vld [vmem:[%s499_s3 + $0x78] sm:$0xff] }
   0x9   :  { %274 = vmatmul.mubr.msk.bf16.vlgmr.msra.gmra.mrb[0].mxu0 %vm49_vm1, %v30_v8  ;;  %v336_v27 = vpack.c.bf16 %v137_v25, %v136_v24  ;;  %v340_v29 = vpack.c.bf16 %v139_v28, %v138_v26  ;;  %v244_v30 = vld [vmem:[%s498_s2] ss:$0 sm:$0xff]  ;;  %p366_p3 = por %p365_p2, %p364_p1 }
   0xa   :  { %v247_v45 = vld [vmem:[%s500_s4] ss:$0 sm:$0xff] }
   0xb   :  { %319 = vmatpush3.bf16.msra.mxu1 %v316_v11  ;;  %p367_p4 = pnand %p366_p3, %p360_p0 }
   0xc   :  { %321 = vmatprep.subr.bf16.mxu1 %v320_v14 }
   0xf   :  { %323 = vmatpush3.bf16.msra.mxu1 %v320_v14 }
  0x10   :  { %325 = vmatprep.subr.bf16.mxu1 %v324_v17 }
  0x13   :  { %327 = vmatpush3.bf16.msra.mxu1 %v324_v17 }
  0x14   :  { %329 = vmatprep.subr.bf16.mxu1 %v328_v20 }
  0x17   :  { %331 = vmatpush3.bf16.msra.mxu1 %v328_v20 }
  0x18   :  { %333 = vmatprep.subr.bf16.mxu1 %v332_v23 }
  0x1b   :  { %335 = vmatpush3.bf16.msra.mxu1 %v332_v23 }
  0x1c   :  { %337 = vmatprep.subr.bf16.mxu1 %v336_v27 }
  0x1f   :  { %339 = vmatpush3.bf16.msra.mxu1 %v336_v27 }
  0x20   :  { %341 = vmatprep.subr.bf16.mxu1 %v340_v29 }
  0x23   :  { %343 = vmatpush3.bf16.msra.mxu1 %v340_v29 }
  0xdc   :  { %v87_v31 = vpop.f32.mrb[0].mxu0 }
  0xdd   :  { %v110_v32 = vadd.f32 %v244_v30, %v87_v31  ;;  %v275_v33 = vpop.f32.mrb[1].mxu0 }
  0xde   :  { %v90_v34 = vpop.f32.mrb[2].mxu0 }
  0xdf   :  { %v245_v35 = vmul.f32 -1.442695, %v110_v32  ;;  %v111_v36 = vadd.f32 %v244_v30, %v90_v34  ;;  %v276_v37 = vpop.f32.mrb[3].mxu0 }
  0xe1   :  { %351 = vpow2.f32 %v245_v35  ;;  %v246_v38 = vmul.f32 -1.442695, %v111_v36 }
  0xe3   :  { %353 = vpow2.f32 %v246_v38 }
  0xeb   :  { %v352_v39 = vpop.eup %351 }
  0xec   :  { %v118_v40 = vadd.f32 1.0, %v352_v39 }
  0xed   :  { %v354_v41 = vpop.eup %353 }
  0xee   :  { %v119_v42 = vadd.f32 1.0, %v354_v41  ;;  %355 = vrcp.f32 %v118_v40 }
  0xf0   :  { %357 = vrcp.f32 %v119_v42 }
  0xf8   :  { %v356_v43 = vpop.eup %355 }
  0xf9   :  { %309 = vmatprep.mubr.f32.mxu1 %v356_v43 }
  0xfa   :  { %v358_v44 = vpop.eup %357 }
  0xfb   :  { %310 = vmatmul.mubr.f32.vlgmr.msra.gmra.mrb[0].mxu1 %v358_v44 }
 0x1ce   :  { %v311_v46 = vpop.f32.mrb[0].mxu1 }
 0x1cf   :  { %v219_v47 = vadd.f32 %v311_v46, %v247_v45  ;;  %v213_v48 = vpop.f32.mrb[1].mxu1 }
 0x1d0   :  { %v214_v49 = vadd.f32 %v247_v45, %v213_v48 }
 0x1d1   :  { %224 = vst.msk [vmem:[#allocation3 + $0x8] sm:$0xff] %vm222_vm2, %v219_v47 }
 0x1d2   :  { %223 = vst.msk [vmem:[#allocation3] sm:$0xff] %vm222_vm2, %v214_v49 }
 0x1d3   :  { %370 = shalt.err (!%p367_p4)
}
 0x1d4   :  { %s371_s4 = scalar_lea.hbm %s501_s5, 256 }
 0x1d5   :  { %p372_p5 = scmp.ne.s32.totalorder %s501_s5, %s371_s4  ;;  %p375_p6 = scmp.lt.u32.totalorder %s371_s4, %s501_s5 }
 0x1d7   :  { %p377_p7 = pnand %p375_p6, %p372_p5 }
 0x1d9   :  { %380 = shalt.err (!%p377_p7)
}
 0x1da   :  { %s386_s15 = smov 128   ;;  %s387_s16 = smov 8  }
 0x1db   :  { %236 = dma.vmem_to_hbm [thread:$0]  %s231_s7, 256, %s501_s5, [#allocation4], %s386_s15, %s386_s15, %s387_s16  }
 0x1dc   :  { %381 = dma.done.wait [#allocation4], 256  }
 0x1dd   :  { %382 = vsyncadd [#allocation4], 4294967040 }
 0x1de   :  { %240 = vsyncpa [#allocation4], 1 }

</bundles_post_ra>
